<compile_context>
chip_gen: v7x
topology: tpu7x:2x2x1
jax: 0.10.0
libtpu: 0.0.40
codegen_flags: <defaults>
</compile_context>

<pallas_src>
import jax
import jax.numpy as jnp
from jax.experimental import pallas as pl
from jax.experimental.pallas import tpu as pltpu

NUM_CLASSES = 21
THRESHOLD = 0.5
NEGPOS_RATIO = 3
VARIANCE = (0.1, 0.2)

LANE = 128


# ----------------------------------------------------------------------------
# Plain-JAX glue: SSD `match` (data-dependent gathers, tiny work per image)
# ----------------------------------------------------------------------------
def match_jax(threshold, truths, priors, variances, labels):
    """truths: (num_obj, 4) xyxy; priors: (P, 4) cx,cy,w,h; labels: (num_obj,)."""
    priors_pt = jnp.concatenate(
        [priors[:, :2] - priors[:, 2:] / 2, priors[:, :2] + priors[:, 2:] / 2], axis=1)

    # jaccard overlap (num_obj, P)
    max_xy = jnp.minimum(truths[:, None, 2:], priors_pt[None, :, 2:])
    min_xy = jnp.maximum(truths[:, None, :2], priors_pt[None, :, :2])
    inter = jnp.maximum(max_xy - min_xy, 0.0)
    inter = inter[:, :, 0] * inter[:, :, 1]
    area_a = ((truths[:, 2] - truths[:, 0]) * (truths[:, 3] - truths[:, 1]))[:, None]
    area_b = ((priors_pt[:, 2] - priors_pt[:, 0]) * (priors_pt[:, 3] - priors_pt[:, 1]))[None, :]
    overlaps = inter / (area_a + area_b - inter)

    best_prior_idx = jnp.argmax(overlaps, axis=1)          # (num_obj,)
    best_truth_overlap = jnp.max(overlaps, axis=0)         # (P,)
    best_truth_idx = jnp.argmax(overlaps, axis=0)          # (P,)

    best_truth_overlap = best_truth_overlap.at[best_prior_idx].set(2.0)
    # TODO(synk): torch's sequential loop makes the *last* duplicate best_prior_idx win;
    # jnp scatter order for duplicates is unspecified (duplicates don't occur in this test).
    best_truth_idx = best_truth_idx.at[best_prior_idx].set(
        jnp.arange(truths.shape[0], dtype=best_truth_idx.dtype))

    matches = truths[best_truth_idx]                        # (P, 4)
    conf = labels[best_truth_idx]                           # (P,)
    conf = jnp.where(best_truth_overlap < threshold, 0.0, conf)

    # encode
    g_cxcy = (matches[:, :2] + matches[:, 2:]) / 2 - priors[:, :2]
    g_cxcy = g_cxcy / (variances[0] * priors[:, 2:])
    g_wh = (matches[:, 2:] - matches[:, :2]) / priors[:, 2:]
    g_wh = jnp.log(g_wh) / variances[1]
    loc = jnp.concatenate([g_cxcy, g_wh], axis=1)           # (P, 4)
    return loc, conf


# ----------------------------------------------------------------------------
# Pallas kernel: Bb images per grid step, lane-dense (priors on lanes) layout,
# per-block partial sums emitted as outputs (batch axis stays "parallel").
# ----------------------------------------------------------------------------
def _make_multibox_kernel(p_real, chunk, n_chunks):
    def kernel(loc_p_ref, loc_t_ref, conf_ref, conf_t_ref,
               out_l_ref, out_c_ref, out_n_ref):
        loc_p = loc_p_ref[...].astype(jnp.float32)      # (Bb, 4, Pp)
        loc_t = loc_t_ref[...].astype(jnp.float32)      # (Bb, 4, Pp)
        conf = conf_ref[...].astype(jnp.float32)        # (Bb, C, Pp)
        conf_t = conf_t_ref[...]                        # (Bb, 1, Pp) int32

        Bb, C, Pp = conf.shape
        pos = conf_t > 0                                # (Bb, 1, Pp)

        # ---- localization: smooth L1 over positive priors (sum reduction) ----
        d = loc_p - loc_t
        ad = jnp.abs(d)
        sl1 = jnp.where(ad < 1.0, 0.5 * d * d, ad - 0.5)            # (Bb, 4, Pp)
        sl1_p = jnp.sum(sl1, axis=1, keepdims=True)                 # (Bb, 1, Pp)
        loss_l_blk = jnp.sum(jnp.where(pos, sl1_p, 0.0))            # scalar

        # ---- per-prior confidence loss: logsumexp(conf) - conf[target] ----
        m = jnp.max(conf, axis=1, keepdims=True)                    # (Bb, 1, Pp)
        lse = jnp.log(jnp.sum(jnp.exp(conf - m), axis=1, keepdims=True)) + m
        cls_iota = jax.lax.broadcasted_iota(jnp.int32, conf.shape, 1)
        conf_gt = jnp.sum(jnp.where(cls_iota == conf_t, conf, 0.0),
                          axis=1, keepdims=True)                    # (Bb, 1, Pp)
        loss_per = lse - conf_gt                                    # (Bb, 1, Pp)

        posf = pos.astype(jnp.float32)
        num_pos = jnp.sum(posf, axis=2, keepdims=True)              # (Bb, 1, 1)
        num_neg = jnp.minimum(float(NEGPOS_RATIO) * num_pos, float(p_real - 1))

        # ---- hard negative mining: rank = #entries with strictly larger loss ----
        # Padded priors get -1e30 so they never rank into the negatives and never
        # inflate a real prior's rank.
        valid = jax.lax.broadcasted_iota(jnp.int32, (Bb, 1, Pp), 2) < p_real
        loss_mine = jnp.where(pos, 0.0, loss_per)
        loss_mine = jnp.where(valid, loss_mine, -1e30)              # (Bb, 1, Pp)
        lm_col = jnp.swapaxes(loss_mine, 1, 2)                      # (Bb, Pp, 1)

        rank = jnp.zeros((Bb, 1, Pp), jnp.float32)
        # Static chunk loop: keeps the (Bb, chunk, Pp) compare tile bounded at SSD-scale P.
        for c in range(n_chunks):
            col = lm_col[:, c * chunk:(c + 1) * chunk, :]           # (Bb, CH, 1)
            cmp = (col > loss_mine).astype(jnp.float32)             # (Bb, CH, Pp)
            # TODO(synk): at very large P, offload this sublane reduce to the MXU
            # (ones(1,CH) @ cmp) if the XLU becomes the binding slot.
            rank = rank + jnp.sum(cmp, axis=1, keepdims=True)       # (Bb, 1, Pp)

        neg = rank < num_neg                                        # (Bb, 1, Pp)
        sel = jnp.logical_or(pos, neg)

        # ---- summed cross entropy over selected (pos | neg) priors ----
        loss_c_blk = jnp.sum(jnp.where(sel, loss_per, 0.0))         # scalar
        num_pos_blk = jnp.sum(num_pos)                              # scalar

        # Lane-broadcast the scalar partials into a lane-dense output tile.
        out_l_ref[...] = jnp.broadcast_to(loss_l_blk, out_l_ref.shape)
        out_c_ref[...] = jnp.broadcast_to(loss_c_blk, out_c_ref.shape)
        out_n_ref[...] = jnp.broadcast_to(num_pos_blk, out_n_ref.shape)

    return kernel


def multibox_loss_pallas(loc_data, conf_data, loc_t, conf_t, *, images_per_block=4):
    N, P, C = conf_data.shape

    # Lane-dense layout: priors -> lanes; pad P to a multiple of 128.
    P_pad = ((P + LANE - 1) // LANE) * LANE
    Bb = min(images_per_block, N)               # re-derive smaller for v7x (64 MiB VMEM)
    G = -(-N // Bb)
    N_pad = G * Bb

    def pad_np(x):
        return jnp.pad(x, ((0, N_pad - x.shape[0]), (0, 0), (0, P_pad - x.shape[2])))

    # No f32 pre-cast here: DMA the original dtype, upcast inside the kernel.
    loc_p_t = pad_np(jnp.swapaxes(loc_data, 1, 2))                      # (N_pad, 4, P_pad)
    loc_t_t = pad_np(jnp.swapaxes(loc_t, 1, 2))                         # (N_pad, 4, P_pad)
    conf_tp = pad_np(jnp.swapaxes(conf_data, 1, 2))                     # (N_pad, C, P_pad)
    conf_tt = pad_np(conf_t.astype(jnp.int32)[:, None, :])              # (N_pad, 1, P_pad)

    chunk = LANE
    n_chunks = P_pad // chunk

    kernel = _make_multibox_kernel(P, chunk, n_chunks)

    out_shape3 = jax.ShapeDtypeStruct((G, 1, LANE), jnp.float32)
    out_spec = pl.BlockSpec((1, 1, LANE), lambda g: (g, 0, 0))

    itemsize = jnp.dtype(conf_data.dtype).itemsize
    flops = int(N_pad) * (P_pad * (6 * C + 24) + n_chunks * chunk * P_pad * 3)
    transcendentals = int(N_pad) * P_pad * (C + 1)
    bytes_accessed = int(
        (loc_p_t.size + loc_t_t.size) * itemsize
        + conf_tp.size * itemsize + conf_tt.size * 4 + 3 * G * LANE * 4)

    out_l, out_c, out_n = pl.pallas_call(
        kernel,
        out_shape=(out_shape3, out_shape3, out_shape3),
        grid_spec=pltpu.PrefetchScalarGridSpec(
            num_scalar_prefetch=0,
            grid=(G,),
            in_specs=[
                pl.BlockSpec((Bb, 4, P_pad), lambda g: (g, 0, 0)),   # loc_data
                pl.BlockSpec((Bb, 4, P_pad), lambda g: (g, 0, 0)),   # loc_t
                pl.BlockSpec((Bb, C, P_pad), lambda g: (g, 0, 0)),   # conf_data
                pl.BlockSpec((Bb, 1, P_pad), lambda g: (g, 0, 0)),   # conf_t
            ],
            out_specs=(out_spec, out_spec, out_spec),
        ),
        compiler_params=pltpu.CompilerParams(
            dimension_semantics=("parallel",),
            vmem_limit_bytes=48 * 1024 * 1024,
        ),
        cost_estimate=pl.CostEstimate(
            flops=flops, transcendentals=transcendentals, bytes_accessed=bytes_accessed),
    )(loc_p_t, loc_t_t, conf_tp, conf_tt)

    loss_l = jnp.sum(out_l[:, 0, 0])
    loss_c = jnp.sum(out_c[:, 0, 0])
    n_norm = jnp.maximum(jnp.sum(out_n[:, 0, 0]), 1.0)
    # torch returns loss_l/N + loss_c/N; combined sum is returned here.
    return (loss_l + loss_c) / n_norm


def multibox_forward(loc_data, conf_data, priors, targets):
    """Mirrors MultiBoxLoss.forward((loc_data, conf_data), priors, targets)."""
    truths = targets[:, :, :4]
    labels = targets[:, :, 4]
    loc_t, conf_t = jax.vmap(
        lambda t, l: match_jax(THRESHOLD, t, priors, VARIANCE, l))(truths, labels)
    return multibox_loss_pallas(loc_data, conf_data, loc_t, conf_t.astype(jnp.int32))


# ----------------------------------------------------------------------------
# Pure-JAX reference (argsort-based mining, like torch) for a sanity check.
# ----------------------------------------------------------------------------
def reference_loss(loc_data, conf_data, loc_t, conf_t):
    N, P, C = conf_data.shape
    pos = conf_t > 0                                        # (N, P)
    d = loc_data - loc_t
    ad = jnp.abs(d)
    sl1 = jnp.where(ad < 1.0, 0.5 * d * d, ad - 0.5)
    loss_l = jnp.sum(jnp.where(pos[..., None], sl1, 0.0))

    lse = jax.scipy.special.logsumexp(conf_data, axis=-1)
    conf_gt = jnp.take_along_axis(conf_data, conf_t[..., None], axis=-1)[..., 0]
    loss_per = lse - conf_gt
    loss_mine = jnp.where(pos, 0.0, loss_per)
    loss_idx = jnp.argsort(-loss_mine, axis=1)
    idx_rank = jnp.argsort(loss_idx, axis=1)
    num_pos = jnp.sum(pos, axis=1, keepdims=True)
    num_neg = jnp.minimum(NEGPOS_RATIO * num_pos, P - 1)
    neg = idx_rank < num_neg
    sel = pos | neg
    loss_c = jnp.sum(jnp.where(sel, loss_per, 0.0))
    Nf = jnp.maximum(jnp.sum(num_pos).astype(jnp.float32), 1.0)
    return (loss_l + loss_c) / Nf


if __name__ == "__main__":
    key = jax.random.PRNGKey(0)
    k1, k2, k3, k4, k5 = jax.random.split(key, 5)

    B, P, C, num_obj = 2, 64, NUM_CLASSES, 3

    loc_data = 0.1 * jax.random.normal(k1, (B, P, 4), jnp.float32)
    conf_data = jax.random.normal(k2, (B, P, C), jnp.float32)

    # priors: 8x8 grid of centers, fixed 0.25 x 0.25 boxes (cx, cy, w, h)
    g = (jnp.arange(8, dtype=jnp.float32) + 0.5) / 8.0
    cx, cy = jnp.meshgrid(g, g, indexing="xy")
    priors = jnp.stack(
        [cx.ravel(), cy.ravel(), jnp.full((P,), 0.25), jnp.full((P,), 0.25)], axis=1)

    # targets: (B, num_obj, 5) = [x1, y1, x2, y2, label], labels in 1..20
    centers = jax.random.uniform(k3, (B, num_obj, 2), minval=0.3, maxval=0.7)
    sizes = jax.random.uniform(k4, (B, num_obj, 2), minval=0.15, maxval=0.4)
    boxes = jnp.concatenate([centers - sizes / 2, centers + sizes / 2], axis=-1)
    labels = jax.random.randint(k5, (B, num_obj, 1), 1, C).astype(jnp.float32)
    targets = jnp.concatenate([boxes, labels], axis=-1)

    loss = multibox_forward(loc_data, conf_data, priors, targets)
    loss = jax.block_until_ready(loss)

    # sanity check against pure-JAX reference
    loc_t_ref, conf_t_ref = jax.vmap(
        lambda t, l: match_jax(THRESHOLD, t, priors, VARIANCE, l))(
            targets[:, :, :4], targets[:, :, 4])
    ref = reference_loss(loc_data, conf_data, loc_t_ref, conf_t_ref.astype(jnp.int32))

    assert jnp.isfinite(loss), f"non-finite loss: {loss}"
    assert abs(float(loss) - float(ref)) < 1e-3, f"mismatch: kernel={loss} ref={ref}"
    print("KERNEL_OK")
</pallas_src>

<mosaic_0001>
module attributes {stable_mosaic.version = 11 : i64} {
  func.func @kernel(%arg0: i32, %arg1: memref<2x4x128xf32, #tpu.memory_space<vmem>>, %arg2: memref<2x4x128xf32, #tpu.memory_space<vmem>>, %arg3: memref<2x21x128xf32, #tpu.memory_space<vmem>>, %arg4: memref<2x1x128xi32, #tpu.memory_space<vmem>>, %arg5: memref<1x1x128xf32, #tpu.memory_space<vmem>>, %arg6: memref<1x1x128xf32, #tpu.memory_space<vmem>>, %arg7: memref<1x1x128xf32, #tpu.memory_space<vmem>>) attributes {dimension_semantics = [#tpu.dimension_semantics<parallel>], iteration_bounds = array<i64: 1>, scalar_prefetch = 0 : i64, scratch_operands = 0 : i64, tpu.core_type = #tpu.core_type<tc>, window_params = [{transform_indices = @transform_0, window_bounds = array<i64: 2, 4, 128>}, {transform_indices = @transform_1, window_bounds = array<i64: 2, 4, 128>}, {transform_indices = @transform_2, window_bounds = array<i64: 2, 21, 128>}, {transform_indices = @transform_3, window_bounds = array<i64: 2, 1, 128>}, {transform_indices = @transform_4, window_bounds = array<i64: 1, 1, 128>}, {transform_indices = @transform_5, window_bounds = array<i64: 1, 1, 128>}, {transform_indices = @transform_6, window_bounds = array<i64: 1, 1, 128>}]} {
    %c0 = arith.constant 0 : index
    %c0_0 = arith.constant 0 : index
    %c0_1 = arith.constant 0 : index
    %0 = vector.load %arg1[%c0, %c0_0, %c0_1] : memref<2x4x128xf32, #tpu.memory_space<vmem>>, vector<2x4x128xf32>
    %c0_2 = arith.constant 0 : index
    %c0_3 = arith.constant 0 : index
    %c0_4 = arith.constant 0 : index
    %1 = vector.load %arg2[%c0_2, %c0_3, %c0_4] : memref<2x4x128xf32, #tpu.memory_space<vmem>>, vector<2x4x128xf32>
    %c0_5 = arith.constant 0 : index
    %c0_6 = arith.constant 0 : index
    %c0_7 = arith.constant 0 : index
    %2 = vector.load %arg3[%c0_5, %c0_6, %c0_7] : memref<2x21x128xf32, #tpu.memory_space<vmem>>, vector<2x21x128xf32>
    %c0_8 = arith.constant 0 : index
    %c0_9 = arith.constant 0 : index
    %c0_10 = arith.constant 0 : index
    %3 = vector.load %arg4[%c0_8, %c0_9, %c0_10] : memref<2x1x128xi32, #tpu.memory_space<vmem>>, vector<2x1x128xi32>
    %c0_i32 = arith.constant 0 : i32
    %4 = vector.broadcast %c0_i32 : i32 to vector<2x1x128xi32>
    %5 = arith.cmpi sgt, %3, %4 : vector<2x1x128xi32>
    %6 = arith.subf %0, %1 : vector<2x4x128xf32>
    %7 = math.absf %6 : vector<2x4x128xf32>
    %cst = arith.constant 1.000000e+00 : f32
    %8 = vector.broadcast %cst : f32 to vector<2x4x128xf32>
    %9 = arith.cmpf olt, %7, %8 : vector<2x4x128xf32>
    %cst_11 = arith.constant 5.000000e-01 : f32
    %10 = vector.broadcast %cst_11 : f32 to vector<2x4x128xf32>
    %11 = arith.mulf %10, %6 : vector<2x4x128xf32>
    %12 = arith.mulf %11, %6 : vector<2x4x128xf32>
    %cst_12 = arith.constant 5.000000e-01 : f32
    %13 = vector.broadcast %cst_12 : f32 to vector<2x4x128xf32>
    %14 = arith.subf %7, %13 : vector<2x4x128xf32>
    %15 = arith.select %9, %12, %14 : vector<2x4x128xi1>, vector<2x4x128xf32>
    %cst_13 = arith.constant dense<0.000000e+00> : vector<2x128xf32>
    %16 = vector.multi_reduction <add>, %15, %cst_13 [1] : vector<2x4x128xf32> to vector<2x128xf32>
    %17 = vector.shape_cast %16 : vector<2x128xf32> to vector<2x1x128xf32>
    %cst_14 = arith.constant 0.000000e+00 : f32
    %18 = vector.broadcast %cst_14 : f32 to vector<2x1x128xf32>
    %19 = arith.select %5, %17, %18 : vector<2x1x128xi1>, vector<2x1x128xf32>
    %20 = vector.shape_cast %19 : vector<2x1x128xf32> to vector<1x2x1x128xf32>
    %cst_15 = arith.constant dense<0.000000e+00> : vector<1xf32>
    %21 = vector.multi_reduction <add>, %20, %cst_15 [1, 2, 3] : vector<1x2x1x128xf32> to vector<1xf32>
    %22 = vector.shape_cast %21 : vector<1xf32> to vector<1x1x1x1xf32>
    %23 = vector.extract %22[0, 0, 0, 0] : f32 from vector<1x1x1x1xf32>
    %cst_16 = arith.constant dense<0xFF800000> : vector<2x128xf32>
    %24 = vector.multi_reduction <maximumf>, %2, %cst_16 [1] : vector<2x21x128xf32> to vector<2x128xf32>
    %25 = vector.shape_cast %24 : vector<2x128xf32> to vector<2x1x128xf32>
    %26 = vector.broadcast %25 : vector<2x1x128xf32> to vector<2x21x128xf32>
    %27 = arith.subf %2, %26 : vector<2x21x128xf32>
    %28 = math.exp %27 : vector<2x21x128xf32>
    %cst_17 = arith.constant dense<0.000000e+00> : vector<2x128xf32>
    %29 = vector.multi_reduction <add>, %28, %cst_17 [1] : vector<2x21x128xf32> to vector<2x128xf32>
    %30 = vector.shape_cast %29 : vector<2x128xf32> to vector<2x1x128xf32>
    %31 = math.log %30 : vector<2x1x128xf32>
    %32 = arith.addf %31, %25 : vector<2x1x128xf32>
    %33 = tpu.iota {dimensions = array<i32: 1>} : vector<2x21x128xi32>
    %34 = vector.broadcast %3 : vector<2x1x128xi32> to vector<2x21x128xi32>
    %35 = arith.cmpi eq, %33, %34 : vector<2x21x128xi32>
    %cst_18 = arith.constant 0.000000e+00 : f32
    %36 = vector.broadcast %cst_18 : f32 to vector<2x21x128xf32>
    %37 = arith.select %35, %2, %36 : vector<2x21x128xi1>, vector<2x21x128xf32>
    %cst_19 = arith.constant dense<0.000000e+00> : vector<2x128xf32>
    %38 = vector.multi_reduction <add>, %37, %cst_19 [1] : vector<2x21x128xf32> to vector<2x128xf32>
    %39 = vector.shape_cast %38 : vector<2x128xf32> to vector<2x1x128xf32>
    %40 = arith.subf %32, %39 : vector<2x1x128xf32>
    %41 = arith.extui %5 : vector<2x1x128xi1> to vector<2x1x128xi32>
    %42 = arith.sitofp %41 : vector<2x1x128xi32> to vector<2x1x128xf32>
    %cst_20 = arith.constant dense<0.000000e+00> : vector<2x1xf32>
    %43 = vector.multi_reduction <add>, %42, %cst_20 [2] : vector<2x1x128xf32> to vector<2x1xf32>
    %44 = vector.shape_cast %43 : vector<2x1xf32> to vector<2x1x1xf32>
    %cst_21 = arith.constant 3.000000e+00 : f32
    %45 = vector.broadcast %cst_21 : f32 to vector<2x1x1xf32>
    %46 = arith.mulf %45, %44 : vector<2x1x1xf32>
    %cst_22 = arith.constant 6.300000e+01 : f32
    %47 = vector.broadcast %cst_22 : f32 to vector<2x1x1xf32>
    %48 = arith.minimumf %46, %47 : vector<2x1x1xf32>
    %49 = tpu.iota {dimensions = array<i32: 2>} : vector<2x1x128xi32>
    %c64_i32 = arith.constant 64 : i32
    %50 = vector.broadcast %c64_i32 : i32 to vector<2x1x128xi32>
    %51 = arith.cmpi slt, %49, %50 : vector<2x1x128xi32>
    %cst_23 = arith.constant 0.000000e+00 : f32
    %52 = vector.broadcast %cst_23 : f32 to vector<2x1x128xf32>
    %53 = arith.select %5, %52, %40 : vector<2x1x128xi1>, vector<2x1x128xf32>
    %cst_24 = arith.constant -1.000000e+30 : f32
    %54 = vector.broadcast %cst_24 : f32 to vector<2x1x128xf32>
    %55 = arith.select %51, %53, %54 : vector<2x1x128xi1>, vector<2x1x128xf32>
    %56 = tpu.transpose %55, [0, 2, 1] : vector<2x1x128xf32> -> vector<2x128x1xf32>
    %cst_25 = arith.constant 0.000000e+00 : f32
    %57 = vector.broadcast %cst_25 : f32 to vector<2x1x128xf32>
    %58 = vector.broadcast %56 : vector<2x128x1xf32> to vector<2x128x128xf32>
    %59 = vector.broadcast %55 : vector<2x1x128xf32> to vector<2x128x128xf32>
    %60 = arith.cmpf ogt, %58, %59 : vector<2x128x128xf32>
    %61 = arith.extui %60 : vector<2x128x128xi1> to vector<2x128x128xi32>
    %62 = arith.sitofp %61 : vector<2x128x128xi32> to vector<2x128x128xf32>
    %cst_26 = arith.constant dense<0.000000e+00> : vector<2x128xf32>
    %63 = vector.multi_reduction <add>, %62, %cst_26 [1] : vector<2x128x128xf32> to vector<2x128xf32>
    %64 = vector.shape_cast %63 : vector<2x128xf32> to vector<2x1x128xf32>
    %65 = arith.addf %57, %64 : vector<2x1x128xf32>
    %66 = vector.broadcast %48 : vector<2x1x1xf32> to vector<2x1x128xf32>
    %67 = arith.cmpf olt, %65, %66 : vector<2x1x128xf32>
    %68 = arith.ori %5, %67 : vector<2x1x128xi1>
    %cst_27 = arith.constant 0.000000e+00 : f32
    %69 = vector.broadcast %cst_27 : f32 to vector<2x1x128xf32>
    %70 = arith.select %68, %40, %69 : vector<2x1x128xi1>, vector<2x1x128xf32>
    %71 = vector.shape_cast %70 : vector<2x1x128xf32> to vector<1x2x1x128xf32>
    %cst_28 = arith.constant dense<0.000000e+00> : vector<1xf32>
    %72 = vector.multi_reduction <add>, %71, %cst_28 [1, 2, 3] : vector<1x2x1x128xf32> to vector<1xf32>
    %73 = vector.shape_cast %72 : vector<1xf32> to vector<1x1x1x1xf32>
    %74 = vector.extract %73[0, 0, 0, 0] : f32 from vector<1x1x1x1xf32>
    %75 = vector.shape_cast %44 : vector<2x1x1xf32> to vector<1x2x1x1xf32>
    %cst_29 = arith.constant dense<0.000000e+00> : vector<1xf32>
    %76 = vector.multi_reduction <add>, %75, %cst_29 [1, 2, 3] : vector<1x2x1x1xf32> to vector<1xf32>
    %77 = vector.shape_cast %76 : vector<1xf32> to vector<1x1x1x1xf32>
    %78 = vector.extract %77[0, 0, 0, 0] : f32 from vector<1x1x1x1xf32>
    %79 = vector.broadcast %23 : f32 to vector<1x1x128xf32>
    %c0_30 = arith.constant 0 : index
    %c0_31 = arith.constant 0 : index
    %c0_32 = arith.constant 0 : index
    %80 = vector.load %arg5[%c0_30, %c0_31, %c0_32] : memref<1x1x128xf32, #tpu.memory_space<vmem>>, vector<1x1x128xf32>
    tpu.vector_store %arg5[%c0_30, %c0_31, %c0_32], %79 {strides = array<i32>} : memref<1x1x128xf32, #tpu.memory_space<vmem>>, vector<1x1x128xf32>,
    %81 = vector.broadcast %74 : f32 to vector<1x1x128xf32>
    %c0_33 = arith.constant 0 : index
    %c0_34 = arith.constant 0 : index
    %c0_35 = arith.constant 0 : index
    %82 = vector.load %arg6[%c0_33, %c0_34, %c0_35] : memref<1x1x128xf32, #tpu.memory_space<vmem>>, vector<1x1x128xf32>
    tpu.vector_store %arg6[%c0_33, %c0_34, %c0_35], %81 {strides = array<i32>} : memref<1x1x128xf32, #tpu.memory_space<vmem>>, vector<1x1x128xf32>,
    %83 = vector.broadcast %78 : f32 to vector<1x1x128xf32>
    %c0_36 = arith.constant 0 : index
    %c0_37 = arith.constant 0 : index
    %c0_38 = arith.constant 0 : index
    %84 = vector.load %arg7[%c0_36, %c0_37, %c0_38] : memref<1x1x128xf32, #tpu.memory_space<vmem>>, vector<1x1x128xf32>
    tpu.vector_store %arg7[%c0_36, %c0_37, %c0_38], %83 {strides = array<i32>} : memref<1x1x128xf32, #tpu.memory_space<vmem>>, vector<1x1x128xf32>,
    return
  }
  func.func @transform_0(%arg0: i32) -> (i32, i32, i32) {
    %c0_i32 = arith.constant 0 : i32
    %c0_i32_0 = arith.constant 0 : i32
    %c0_i32_1 = arith.constant 0 : i32
    return %arg0, %c0_i32, %c0_i32_0 : i32, i32, i32
  }
  func.func @transform_1(%arg0: i32) -> (i32, i32, i32) {
    %c0_i32 = arith.constant 0 : i32
    %c0_i32_0 = arith.constant 0 : i32
    %c0_i32_1 = arith.constant 0 : i32
    return %arg0, %c0_i32, %c0_i32_0 : i32, i32, i32
  }
  func.func @transform_2(%arg0: i32) -> (i32, i32, i32) {
    %c0_i32 = arith.constant 0 : i32
    %c0_i32_0 = arith.constant 0 : i32
    %c0_i32_1 = arith.constant 0 : i32
    return %arg0, %c0_i32, %c0_i32_0 : i32, i32, i32
  }
  func.func @transform_3(%arg0: i32) -> (i32, i32, i32) {
    %c0_i32 = arith.constant 0 : i32
    %c0_i32_0 = arith.constant 0 : i32
    %c0_i32_1 = arith.constant 0 : i32
    return %arg0, %c0_i32, %c0_i32_0 : i32, i32, i32
  }
  func.func @transform_4(%arg0: i32) -> (i32, i32, i32) {
    %c0_i32 = arith.constant 0 : i32
    %c0_i32_0 = arith.constant 0 : i32
    %c0_i32_1 = arith.constant 0 : i32
    return %arg0, %c0_i32, %c0_i32_0 : i32, i32, i32
  }
  func.func @transform_5(%arg0: i32) -> (i32, i32, i32) {
    %c0_i32 = arith.constant 0 : i32
    %c0_i32_0 = arith.constant 0 : i32
    %c0_i32_1 = arith.constant 0 : i32
    return %arg0, %c0_i32, %c0_i32_0 : i32, i32, i32
  }
  func.func @transform_6(%arg0: i32) -> (i32, i32, i32) {
    %c0_i32 = arith.constant 0 : i32
    %c0_i32_0 = arith.constant 0 : i32
    %c0_i32_1 = arith.constant 0 : i32
    return %arg0, %c0_i32, %c0_i32_0 : i32, i32, i32
  }
}

</mosaic_0001>

<bundles_post_ra>
// kernel: tpu_custom_call.1
= control target key start
LH: loop header
LB: loop body
LE: loop exit
PB: predicated region body
PF: predicated region fallthrough
CT: control target
= control target key end

     0   :  { %12 = vsyncpa [#allocation3], 0  ;;  %vm80_vm0 = vcmask 1044480   ;;  %v141_v2 = vlaneseq  ;;  %vm67_vm1 = vcmask 1040384   ;;  %v791_v15 = vmov 0   ;;  %s1077_s0 = inlined_call_operand.vmem [shape: f32[2,4,128], index: 0, kind: input, shape index: {}]   ;;  %s1078_s1 = inlined_call_operand.vmem [shape: f32[2,4,128], index: 1, kind: input, shape index: {}]   ;;  %s1079_s2 = inlined_call_operand.vmem [shape: f32[2,21,128], index: 2, kind: input, shape index: {}]   ;;  %s1080_s3 = inlined_call_operand.vmem [shape: s32[2,1,128], index: 3, kind: input, shape index: {}]   ;;  %s1081_s4 = inlined_call_operand.hbm [shape: f32[1,1,128], index: 4, kind: output, shape index: {0}]   ;;  %s1082_s5 = inlined_call_operand.hbm [shape: f32[1,1,128], index: 5, kind: output, shape index: {1}]   ;;  %s1083_s6 = inlined_call_operand.hbm [shape: f32[1,1,128], index: 6, kind: output, shape index: {2}]  }
   0x1   :  { %v834_v0 = vld [vmem:[%s1079_s2] sm:$0xff]  ;;  %v839_v1 = vld [vmem:[%s1079_s2 + $0x10] sm:$0x1f]  ;;  %v844_v3 = vld [vmem:[%s1079_s2 + $0x8] sm:$0xff]  ;;  %704 = vset.pattern.permute.xlu1 %v791_v15 }
   0x2   :  { %v81_v4 = vsel %vm80_vm0, %v839_v1, -inf  ;;  %v851_v5 = vld [vmem:[%s1080_s3] sm:$0x1]  ;;  %v855_v7 = vshrl.u32 %v141_v2, 7  ;;  %v29_v8 = vld [vmem:[%s1079_s2 + $0x18] sm:$0xff] }
   0x3   :  { %v82_v6 = vmax.f32 %v834_v0, %v81_v4  ;;  %v31_v9 = vld [vmem:[%s1079_s2 + $0x28] sm:$0x1f]  ;;  %v866_v10 = vld [vmem:[%s1080_s3 + $0x1] sm:$0x1]  ;;  %vm34_vm2 = vcmp.gt.s32.totalorder %v851_v5, 0 }
   0x4   :  { %v90_v11 = vsel %vm80_vm0, %v31_v9, -inf  ;;  %v872_v13 = vsub.s32 0, %v855_v7  ;;  %v30_v14 = vld [vmem:[%s1079_s2 + $0x20] sm:$0xff] }
   0x5   :  { %v83_v12 = vmax.f32 %v82_v6, %v844_v3 }
   0x6   :  { %13 = vsyncpa [#allocation5], 0  ;;  %v91_v16 = vmax.f32 %v29_v8, %v90_v11  ;;  %v792_v17 = vmov 0.0   ;;  %v152_v20 = vrot.slane %v866_v10, %v872_v13  ;;  %v143_v24 = vadd.s32 8, %v855_v7 }
   0x7   :  { %v658_v18 = vsel %vm34_vm2, 1.0, %v792_v17  ;;  %v84_v19 = vrot.slane %v83_v12, 4  ;;  %v144_v25 = vadd.s32 16, %v855_v7  ;;  %v148_v51 = vrot.slane %v851_v5, %v872_v13 }
   0x8   :  { %v189_v21 = vsel %vm67_vm1, %v658_v18, 0.0  ;;  %v92_v22 = vmax.f32 %v91_v16, %v30_v14  ;;  %vm156_vm3 = vcmp.eq.s32.totalorder %v855_v7, %v152_v20  ;;  %vm157_vm4 = vcmp.eq.s32.totalorder %v143_v24, %v152_v20 }
   0x9   :  { %190 = vadd.xlane.f32.xlu1 %v189_v21  ;;  %v85_v23 = vmax.f32 %v83_v12, %v84_v19  ;;  %vm158_vm5 = vcmp.eq.s32.totalorder %v144_v25, %v152_v20  ;;  %v162_v29 = vsel %vm156_vm3, %v29_v8, 0.0  ;;  %v163_v31 = vsel %vm157_vm4, %v30_v14, 0.0 }
   0xa   :  { %v93_v26 = vrot.slane %v92_v22, 4  ;;  %v164_v32 = vsel %vm158_vm5, %v31_v9, 0.0  ;;  %v174_v34 = vadd.f32 %v163_v31, %v162_v29  ;;  %vm153_vm6 = vcmp.eq.s32.totalorder %v855_v7, %v148_v51 }
   0xb   :  { %v86_v27 = vrot.slane %v85_v23, 2  ;;  %v175_v35 = vsel %vm80_vm0, %v164_v32, 0.0  ;;  %vm154_vm7 = vcmp.eq.s32.totalorder %v143_v24, %v148_v51  ;;  %vm155_vm8 = vcmp.eq.s32.totalorder %v144_v25, %v148_v51 }
   0xc   :  { %v94_v28 = vmax.f32 %v92_v22, %v93_v26  ;;  %v176_v38 = vadd.f32 %v175_v35, %v174_v34  ;;  %v159_v55 = vsel %vm153_vm6, %v834_v0, 0.0  ;;  %v160_v56 = vsel %vm154_vm7, %v844_v3, 0.0 }
   0xd   :  { %v87_v30 = vmax.f32 %v85_v23, %v86_v27  ;;  %v161_v57 = vsel %vm155_vm8, %v839_v1, 0.0  ;;  %v165_v60 = vadd.f32 %v160_v56, %v159_v55  ;;  %vm35_vm10 = vcmp.gt.s32.totalorder %v866_v10, 0 }
   0xe   :  { %v95_v33 = vrot.slane %v94_v28, 2  ;;  %v166_v63 = vsel %vm80_vm0, %v161_v57, 0.0  ;;  %v177_v22 = vrot.slane %v176_v38, 4  ;;  %vm50_vm5 = vcmask 1043456  }
   0xf   :  { %v88_v36 = vrot.slane %v87_v30, 1  ;;  %v167_v11 = vadd.f32 %v166_v63, %v165_v60 }
  0x10   :  { %v96_v37 = vmax.f32 %v94_v28, %v95_v33  ;;  %v178_v28 = vadd.f32 %v177_v22, %v176_v38 }
  0x11   :  { %v888_v39 = vmax.f32 %v87_v30, %v88_v36  ;;  %v168_v16 = vrot.slane %v167_v11, 4 }
  0x12   :  { %v97_v40 = vrot.slane %v96_v37, 1  ;;  %v179_v32 = vrot.slane %v178_v28, 2 }
  0x13   :  { %v99_v41 = vsub.f32 %v834_v0, %v888_v39  ;;  %v100_v42 = vsub.f32 %v844_v3, %v888_v39  ;;  %v101_v43 = vsub.f32 %v839_v1, %v888_v39  ;;  %v169_v23 = vadd.f32 %v168_v16, %v167_v11 }
  0x14   :  { %v896_v44 = vmax.f32 %v96_v37, %v97_v40  ;;  %v180_v34 = vadd.f32 %v179_v32, %v178_v28 }
  0x15   :  { %v105_v45 = vmul.f32 1.442695, %v99_v41  ;;  %v107_v46 = vmul.f32 1.442695, %v100_v42  ;;  %v109_v47 = vmul.f32 1.442695, %v101_v43 }
  0x16   :  { %v102_v48 = vsub.f32 %v29_v8, %v896_v44  ;;  %v103_v49 = vsub.f32 %v30_v14, %v896_v44  ;;  %v104_v50 = vsub.f32 %v31_v9, %v896_v44  ;;  %v170_v29 = vrot.slane %v169_v23, 2 }
  0x17   :  { %705 = vpow2.f32 %v105_v45  ;;  %v181_v37 = vrot.slane %v180_v34, 1  ;;  %v200_v42 = vand.u32 127, %v141_v2 }
  0x18   :  { %707 = vpow2.f32 %v107_v46  ;;  %v111_v52 = vmul.f32 1.442695, %v102_v48  ;;  %v113_v53 = vmul.f32 1.442695, %v103_v49  ;;  %v115_v54 = vmul.f32 1.442695, %v104_v50 }
  0x19   :  { %709 = vpow2.f32 %v109_v47  ;;  %v171_v33 = vadd.f32 %v170_v29, %v169_v23  ;;  %v182_v38 = vadd.f32 %v181_v37, %v180_v34  ;;  %vm201_vm9 = vcmp.lt.s32.totalorder %v200_v42, 64 }
  0x1a   :  { %711 = vpow2.f32 %v111_v52 }
  0x1b   :  { %713 = vpow2.f32 %v113_v53  ;;  %v172_v35 = vrot.slane %v171_v33, 1 }
  0x1c   :  { %715 = vpow2.f32 %v115_v54 }
  0x1d   :  { %v173_v41 = vadd.f32 %v172_v35, %v171_v33 }
  0x21   :  { %v706_v58 = vpop.eup %705 }
  0x22   :  { %v708_v59 = vpop.eup %707 }
  0x23   :  { %v710_v61 = vpop.eup %709  ;;  %v117_v62 = vadd.f32 %v708_v59, %v706_v58 }
  0x24   :  { %v712_v4 = vpop.eup %711  ;;  %v118_v6 = vsel %vm80_vm0, %v710_v61, 0.0 }
  0x25   :  { %v714_v7 = vpop.eup %713  ;;  %v119_v8 = vadd.f32 %v118_v6, %v117_v62 }
  0x26   :  { %v716_v9 = vpop.eup %715  ;;  %v126_v12 = vadd.f32 %v714_v7, %v712_v4 }
  0x27   :  { %v120_v0 = vrot.slane %v119_v8, 4  ;;  %v127_v3 = vsel %vm80_vm0, %v716_v9, 0.0 }
  0x28   :  { %v128_v14 = vadd.f32 %v127_v3, %v126_v12 }
  0x29   :  { %v121_v1 = vadd.f32 %v120_v0, %v119_v8 }
  0x2a   :  { %v129_v18 = vrot.slane %v128_v14, 4 }
  0x2b   :  { %v122_v19 = vrot.slane %v121_v1, 2 }
  0x2c   :  { %v130_v20 = vadd.f32 %v129_v18, %v128_v14 }
  0x2d   :  { %v123_v21 = vadd.f32 %v122_v19, %v121_v1 }
  0x2e   :  { %v131_v24 = vrot.slane %v130_v20, 2 }
  0x2f   :  { %v124_v25 = vrot.slane %v123_v21, 1 }
  0x30   :  { %v132_v26 = vadd.f32 %v131_v24, %v130_v20 }
  0x31   :  { %v125_v27 = vadd.f32 %v124_v25, %v123_v21 }
  0x32   :  { %v133_v30 = vrot.slane %v132_v26, 1 }
  0x33   :  { %717 = vlog2.f32 %v125_v27 }
  0x34   :  { %v134_v31 = vadd.f32 %v133_v30, %v132_v26 }
  0x36   :  { %719 = vlog2.f32 %v134_v31 }
  0x3d   :  { %v718_v36 = vpop.eup %717 }
  0x3e   :  { %v136_v40 = vmul.f32 0.6931472, %v718_v36 }
  0x40   :  { %v720_v43 = vpop.eup %719  ;;  %v139_v45 = vadd.f32 %v136_v40, %v888_v39  ;;  %v22_v40 = vld [vmem:[%s1077_s0] sm:$0xf] }
  0x41   :  { %v138_v46 = vmul.f32 0.6931472, %v720_v43  ;;  %v25_v43 = vld [vmem:[%s1078_s1 + $0x4] sm:$0xf] }
  0x42   :  { %v912_v47 = vsub.f32 %v139_v45, %v173_v41  ;;  %v24_v41 = vld [vmem:[%s1078_s1] sm:$0xf]  ;;  %s793_s1 = smov [#allocation2]  }
  0x43   :  { %v140_v48 = vadd.f32 %v138_v46, %v896_v44  ;;  %v36_v45 = vsub.f32 %v22_v40, %v24_v41  ;;  %s621_s19 = sshll.u32 %s793_s1, 4  ;;  %s622_s19 = int_to_ptr.vmem [resolvable:$true] %s621_s19 }
  0x44   :  { %v202_v49 = vsel %vm34_vm2, 0.0, %v912_v47  ;;  %s721_s20 = scalar_lea.vmem %s622_s19, 16  ;;  %s725_s21 = scalar_lea.vmem %s622_s19, 32 }
  0x45   :  { %v204_v50 = vsel %vm201_vm9, %v202_v49, -1e+30  ;;  %v918_v51 = vsub.f32 %v140_v48, %v182_v38  ;;  %v38_v49 = vand.u32 2147483647, %v36_v45  ;;  %p722_p0 = scmp.ne.s32.totalorder %s622_s19, %s721_s20  ;;  %p726_p1 = scmp.lt.s32.totalorder %s622_s19, %s622_s19 }
  0x46   :  { %206 = vxpose.xlu0.b32.start.end [1/1] (short) %v204_v50, 128  ;;  %v931_v18 = vrot.slane %v204_v50, %v872_v13  ;;  %v42_v50 = vmul.f32 0.5, %v36_v45  ;;  %p727_p2 = scmp.lt.s32.totalorder %s725_s21, %s721_s20 }
  0x47   :  { %v203_v2 = vsel %vm35_vm10, 0.0, %v918_v51  ;;  %vm40_vm3 = vcmp.lt.f32.partialorder %v38_v49, 1.0 }
  0x48   :  { %v924_v39 = vsel %vm201_vm9, %v203_v2, -1e+30  ;;  %p728_p3 = por %p727_p2, %p726_p1 }
  0x49   :  { %v939_v31 = vrot.slane %v924_v39, %v872_v13  ;;  %v23_v13 = vld [vmem:[%s1077_s0 + $0x4] sm:$0xf] }
  0x4a   :  { %v37_v38 = vsub.f32 %v23_v13, %v25_v43  ;;  %p729_p4 = pnand %p728_p3, %p722_p0 }
  0x4c   :  { %v39_v2 = vand.u32 2147483647, %v37_v38 }
  0x4e   :  { %vm41_vm4 = vcmp.lt.f32.partialorder %v39_v2, 1.0 }
  0x83   :  { %238 = vxpose.xlu0.b32.start.end [1/1] (short) %v924_v39, 128  ;;  %v43_v39 = vmul.f32 0.5, %v37_v38 }
  0x96   :  { %v928_v16 = vpop.xlane.xlu1 %190 }
  0xac   :  { %703 = vset.pattern.permute.xlu0 %v791_v15 }
  0xc6   :  { %v222_v44 = vpop.trf.xlu0 }
  0xc7   :  { %272 = vperm.xlu1 %704, %v222_v44  }
  0xca   :  { %v223_v52 = vpop.trf.xlu0 }
  0xcb   :  { %277 = vperm.xlu1 %704, %v223_v52   ;;  %v659_v52 = vsel %vm35_vm10, 1.0, %v792_v17 }
  0xce   :  { %v224_v53 = vpop.trf.xlu0 }
  0xd2   :  { %v225_v54 = vpop.trf.xlu0 }
  0xd6   :  { %v226_v55 = vpop.trf.xlu0 }
  0xda   :  { %v227_v56 = vpop.trf.xlu0 }
  0xde   :  { %v228_v57 = vpop.trf.xlu0 }
  0xe2   :  { %v229_v58 = vpop.trf.xlu0 }
  0xe6   :  { %v230_v59 = vpop.trf.xlu0 }
  0xea   :  { %v231_v60 = vpop.trf.xlu0 }
  0xee   :  { %v232_v61 = vpop.trf.xlu0 }
  0xf2   :  { %v233_v62 = vpop.trf.xlu0 }
  0xf6   :  { %v234_v63 = vpop.trf.xlu0 }
  0xfa   :  { %v235_v4 = vpop.trf.xlu0 }
  0xfe   :  { %v236_v6 = vpop.trf.xlu0 }
 0x102   :  { %v237_v7 = vpop.trf.xlu0 }
 0x106   :  { %v254_v8 = vpop.trf.xlu0 }
 0x107   :  { %352 = vperm.xlu1 %704, %v254_v8  }
 0x10a   :  { %v255_v15 = vpop.trf.xlu0 }
 0x10b   :  { %357 = vperm.xlu1 %704, %v255_v15  }
 0x10e   :  { %v256_v9 = vpop.trf.xlu0 }
 0x10f   :  { %282 = vperm.xlu1 %704, %v224_v53   ;;  %v44_v53 = vmul.f32 %v42_v50, %v36_v45 }
 0x112   :  { %v257_v11 = vpop.trf.xlu0 }
 0x113   :  { %362 = vperm.xlu1 %704, %v256_v9  }
 0x116   :  { %v258_v12 = vpop.trf.xlu0 }
 0x117   :  { %287 = vperm.xlu1 %704, %v225_v54   ;;  %v656_v54 = vadd.f32 -0.5, %v38_v49 }
 0x11a   :  { %v259_v0 = vpop.trf.xlu0 }
 0x11b   :  { %367 = vperm.xlu1 %704, %v257_v11  }
 0x11e   :  { %v260_v3 = vpop.trf.xlu0 }
 0x11f   :  { %292 = vperm.xlu1 %704, %v226_v55  }
 0x122   :  { %v261_v14 = vpop.trf.xlu0 }
 0x123   :  { %372 = vperm.xlu1 %704, %v258_v12  }
 0x126   :  { %v262_v1 = vpop.trf.xlu0 }
 0x127   :  { %297 = vperm.xlu1 %704, %v227_v56   ;;  %392 = vperm.xlu0 %703, %v262_v1   ;;  %v45_v56 = vmul.f32 %v43_v39, %v37_v38 }
 0x12a   :  { %v263_v19 = vpop.trf.xlu0 }
 0x12b   :  { %377 = vperm.xlu1 %704, %v259_v0  }
 0x12e   :  { %v264_v24 = vpop.trf.xlu0 }
 0x12f   :  { %302 = vperm.xlu1 %704, %v228_v57  }
 0x132   :  { %v265_v26 = vpop.trf.xlu0 }
 0x133   :  { %382 = vperm.xlu1 %704, %v260_v3  }
 0x136   :  { %v266_v27 = vpop.trf.xlu0 }
 0x137   :  { %307 = vperm.xlu1 %704, %v229_v58   ;;  %v657_v58 = vadd.f32 -0.5, %v39_v2 }
 0x13a   :  { %v267_v28 = vpop.trf.xlu0 }
 0x13b   :  { %387 = vperm.xlu1 %704, %v261_v14  }
 0x13e   :  { %v268_v29 = vpop.trf.xlu0 }
 0x13f   :  { %312 = vperm.xlu1 %704, %v230_v59   ;;  %v48_v59 = vsel %vm40_vm3, %v44_v53, %v656_v54 }
 0x142   :  { %v269_v30 = vpop.trf.xlu0 }
 0x143   :  { %317 = vperm.xlu1 %704, %v231_v60   ;;  %v51_v60 = vsel %vm50_vm5, %v48_v59, 0.0 }
 0x146   :  { %v273_v20 = vpop.permute.xlu1 %272 }
 0x147   :  { %vm438_vm11 = vcmp.gt.f32.partialorder %v273_v20, %v931_v18  ;;  %397 = vperm.xlu1 %704, %v263_v19  }
 0x148   :  { %v660_v22 = vsel %vm438_vm11, 1.0, %v792_v17 }
 0x14a   :  { %v278_v21 = vpop.permute.xlu1 %277 }
 0x14b   :  { %vm439_vm12 = vcmp.gt.f32.partialorder %v278_v21, %v931_v18  ;;  %322 = vperm.xlu1 %704, %v232_v61  }
 0x14c   :  { %v661_v23 = vsel %vm439_vm12, 1.0, %v792_v17 }
 0x14d   :  { %v534_v25 = vadd.f32 %v661_v23, %v660_v22 }
 0x14f   :  { %402 = vperm.xlu1 %704, %v264_v24  }
 0x153   :  { %327 = vperm.xlu1 %704, %v233_v62   ;;  %v192_v62 = vsel %vm67_vm1, %v659_v52, 0.0 }
 0x157   :  { %407 = vperm.xlu1 %704, %v265_v26  }
 0x15b   :  { %332 = vperm.xlu1 %704, %v234_v63   ;;  %v49_v63 = vsel %vm41_vm4, %v45_v56, %v657_v58 }
 0x15f   :  { %412 = vperm.xlu1 %704, %v266_v27  }
 0x163   :  { %337 = vperm.xlu1 %704, %v235_v4   ;;  %v52_v4 = vrot.slane %v51_v60, 4 }
 0x165   :  { %v53_v15 = vadd.f32 %v52_v4, %v51_v60 }
 0x167   :  { %417 = vperm.xlu1 %704, %v267_v28   ;;  %v54_v12 = vrot.slane %v53_v15, 2 }
 0x169   :  { %v55_v1 = vadd.f32 %v54_v12, %v53_v15 }
 0x16b   :  { %342 = vperm.xlu1 %704, %v236_v6   ;;  %v56_v21 = vrot.slane %v55_v1, 1 }
 0x16f   :  { %422 = vperm.xlu1 %704, %v268_v29  }
 0x173   :  { %347 = vperm.xlu1 %704, %v237_v7   ;;  %v58_v7 = vsel %vm50_vm5, %v49_v63, 0.0 }
 0x174   :  { %v59_v9 = vrot.slane %v58_v7, 4 }
 0x176   :  { %v60_v0 = vadd.f32 %v59_v9, %v58_v7 }
 0x177   :  { %427 = vperm.xlu1 %704, %v269_v30  }
 0x178   :  { %v61_v19 = vrot.slane %v60_v0, 2 }
 0x17a   :  { %v62_v22 = vadd.f32 %v61_v19, %v60_v0 }
 0x17c   :  { %v63_v26 = vrot.slane %v62_v22, 1 }
 0x17e   :  { %v64_v28 = vadd.f32 %v63_v26, %v62_v22 }
 0x186   :  { %v353_v32 = vpop.permute.xlu1 %352 }
 0x187   :  { %vm454_vm13 = vcmp.gt.f32.partialorder %v353_v32, %v939_v31 }
 0x188   :  { %v676_v34 = vsel %vm454_vm13, 1.0, %v792_v17 }
 0x18a   :  { %v358_v33 = vpop.permute.xlu1 %357 }
 0x18b   :  { %vm455_vm14 = vcmp.gt.f32.partialorder %v358_v33, %v939_v31 }
 0x18c   :  { %v677_v35 = vsel %vm455_vm14, 1.0, %v792_v17 }
 0x18d   :  { %v555_v36 = vadd.f32 %v677_v35, %v676_v34  ;;  %v66_v34 = vsel %vm35_vm10, %v64_v28, 0.0 }
 0x18e   :  { %v283_v37 = vpop.permute.xlu1 %282  ;;  %v69_v35 = vsel %vm67_vm1, %v66_v34, 0.0 }
 0x18f   :  { %vm440_vm15 = vcmp.gt.f32.partialorder %v283_v37, %v931_v18 }
 0x190   :  { %v662_v42 = vsel %vm440_vm15, 1.0, %v792_v17 }
 0x191   :  { %v535_v46 = vadd.f32 %v662_v42, %v534_v25  ;;  %v57_v25 = vadd.f32 %v56_v21, %v55_v1 }
 0x192   :  { %v363_v48 = vpop.permute.xlu1 %362 }
 0x193   :  { %vm456_vm0 = vcmp.gt.f32.partialorder %v363_v48, %v939_v31  ;;  %v65_v29 = vsel %vm34_vm2, %v57_v25, 0.0 }
 0x194   :  { %v678_v44 = vsel %vm456_vm0, 1.0, %v792_v17  ;;  %v68_v32 = vsel %vm67_vm1, %v65_v29, 0.0 }
 0x195   :  { %v556_v55 = vadd.f32 %v678_v44, %v555_v36  ;;  %v70_v37 = vadd.f32 %v69_v35, %v68_v32 }
 0x196   :  { %v288_v57 = vpop.permute.xlu1 %287 }
 0x197   :  { %vm441_vm6 = vcmp.gt.f32.partialorder %v288_v57, %v931_v18 }
 0x198   :  { %v663_v61 = vsel %vm441_vm6, 1.0, %v792_v17 }
 0x199   :  { %v536_v6 = vadd.f32 %v663_v61, %v535_v46 }
 0x19a   :  { %v368_v8 = vpop.permute.xlu1 %367 }
 0x19b   :  { %vm457_vm7 = vcmp.gt.f32.partialorder %v368_v8, %v939_v31  ;;  %193 = vadd.xlane.f32.xlu1 %v192_v62 }
 0x19c   :  { %v679_v11 = vsel %vm457_vm7, 1.0, %v792_v17 }
 0x19d   :  { %v557_v3 = vadd.f32 %v679_v11, %v556_v55 }
 0x19e   :  { %v293_v14 = vpop.permute.xlu1 %292 }
 0x19f   :  { %vm442_vm8 = vcmp.gt.f32.partialorder %v293_v14, %v931_v18  ;;  %71 = vadd.xlane.f32.xlu1 %v70_v37 }
 0x1a0   :  { %v664_v20 = vsel %vm442_vm8, 1.0, %v792_v17 }
 0x1a1   :  { %v537_v23 = vadd.f32 %v664_v20, %v536_v6 }
 0x1a2   :  { %v373_v24 = vpop.permute.xlu1 %372 }
 0x1a3   :  { %vm458_vm9 = vcmp.gt.f32.partialorder %v373_v24, %v939_v31 }
 0x1a4   :  { %v680_v27 = vsel %vm458_vm9, 1.0, %v792_v17 }
 0x1a5   :  { %v558_v30 = vadd.f32 %v680_v27, %v557_v3 }
 0x1a6   :  { %v298_v33 = vpop.permute.xlu1 %297  ;;  %v393_v2 = vpop.permute.xlu0 %392 }
 0x1a7   :  { %vm443_vm11 = vcmp.gt.f32.partialorder %v298_v33, %v931_v18  ;;  %vm462_vm0 = vcmp.gt.f32.partialorder %v393_v2, %v939_v31 }
 0x1a8   :  { %v665_v36 = vsel %vm443_vm11, 1.0, %v792_v17  ;;  %v684_v54 = vsel %vm462_vm0, 1.0, %v792_v17 }
 0x1a9   :  { %v538_v40 = vadd.f32 %v665_v36, %v537_v23 }
 0x1aa   :  { %v378_v13 = vpop.permute.xlu1 %377 }
 0x1ab   :  { %vm459_vm12 = vcmp.gt.f32.partialorder %v378_v13, %v939_v31 }
 0x1ac   :  { %v681_v41 = vsel %vm459_vm12, 1.0, %v792_v17 }
 0x1ad   :  { %v559_v42 = vadd.f32 %v681_v41, %v558_v30 }
 0x1ae   :  { %v303_v43 = vpop.permute.xlu1 %302 }
 0x1af   :  { %vm444_vm13 = vcmp.gt.f32.partialorder %v303_v43, %v931_v18 }
 0x1b0   :  { %v666_v45 = vsel %vm444_vm13, 1.0, %v792_v17 }
 0x1b1   :  { %v539_v46 = vadd.f32 %v666_v45, %v538_v40 }
 0x1b2   :  { %v383_v38 = vpop.permute.xlu1 %382 }
 0x1b3   :  { %vm460_vm14 = vcmp.gt.f32.partialorder %v383_v38, %v939_v31 }
 0x1b4   :  { %v682_v48 = vsel %vm460_vm14, 1.0, %v792_v17 }
 0x1b5   :  { %v560_v49 = vadd.f32 %v682_v48, %v559_v42 }
 0x1b6   :  { %v308_v50 = vpop.permute.xlu1 %307 }
 0x1b7   :  { %vm445_vm15 = vcmp.gt.f32.partialorder %v308_v50, %v931_v18 }
 0x1b8   :  { %v667_v39 = vsel %vm445_vm15, 1.0, %v792_v17 }
 0x1b9   :  { %v540_v44 = vadd.f32 %v667_v39, %v539_v46 }
 0x1ba   :  { %v388_v52 = vpop.permute.xlu1 %387 }
 0x1bb   :  { %vm461_vm3 = vcmp.gt.f32.partialorder %v388_v52, %v939_v31 }
 0x1bc   :  { %v683_v53 = vsel %vm461_vm3, 1.0, %v792_v17 }
 0x1bd   :  { %v561_v55 = vadd.f32 %v683_v53, %v560_v49 }
 0x1be   :  { %v313_v56 = vpop.permute.xlu1 %312 }
 0x1bf   :  { %v562_v57 = vadd.f32 %v684_v54, %v561_v55  ;;  %vm446_vm4 = vcmp.gt.f32.partialorder %v313_v56, %v931_v18  ;;  %v195_v54 = vmul.f32 3.0, %v928_v16 }
 0x1c0   :  { %v668_v58 = vsel %vm446_vm4, 1.0, %v792_v17 }
 0x1c1   :  { %v541_v59 = vadd.f32 %v668_v58, %v540_v44  ;;  %v197_v56 = vmin.f32 %v195_v54, 63.0 }
 0x1c2   :  { %v318_v60 = vpop.permute.xlu1 %317 }
 0x1c3   :  { %vm447_vm5 = vcmp.gt.f32.partialorder %v318_v60, %v931_v18 }
 0x1c4   :  { %v669_v61 = vsel %vm447_vm5, 1.0, %v792_v17 }
 0x1c5   :  { %v542_v62 = vadd.f32 %v669_v61, %v541_v59 }
 0x1c6   :  { %v398_v63 = vpop.permute.xlu1 %397 }
 0x1c7   :  { %vm463_vm6 = vcmp.gt.f32.partialorder %v398_v63, %v939_v31 }
 0x1c8   :  { %v685_v4 = vsel %vm463_vm6, 1.0, %v792_v17  ;;  %vm596_vm6 = vcmask 0  }
 0x1c9   :  { %v563_v6 = vadd.f32 %v685_v4, %v562_v57 }
 0x1ca   :  { %v323_v7 = vpop.permute.xlu1 %322 }
 0x1cb   :  { %vm448_vm7 = vcmp.gt.f32.partialorder %v323_v7, %v931_v18 }
 0x1cc   :  { %v670_v8 = vsel %vm448_vm7, 1.0, %v792_v17 }
 0x1cd   :  { %v543_v15 = vadd.f32 %v670_v8, %v542_v62 }
 0x1ce   :  { %v403_v9 = vpop.permute.xlu1 %402 }
 0x1cf   :  { %vm464_vm8 = vcmp.gt.f32.partialorder %v403_v9, %v939_v31 }
 0x1d0   :  { %v686_v11 = vsel %vm464_vm8, 1.0, %v792_v17 }
 0x1d1   :  { %v564_v12 = vadd.f32 %v686_v11, %v563_v6 }
 0x1d2   :  { %v328_v0 = vpop.permute.xlu1 %327 }
 0x1d3   :  { %vm449_vm9 = vcmp.gt.f32.partialorder %v328_v0, %v931_v18 }
 0x1d4   :  { %v671_v3 = vsel %vm449_vm9, 1.0, %v792_v17 }
 0x1d5   :  { %v544_v14 = vadd.f32 %v671_v3, %v543_v15 }
 0x1d6   :  { %v408_v1 = vpop.permute.xlu1 %407 }
 0x1d7   :  { %vm465_vm11 = vcmp.gt.f32.partialorder %v408_v1, %v939_v31 }
 0x1d8   :  { %v687_v19 = vsel %vm465_vm11, 1.0, %v792_v17 }
 0x1d9   :  { %v565_v20 = vadd.f32 %v687_v19, %v564_v12 }
 0x1da   :  { %v333_v21 = vpop.permute.xlu1 %332 }
 0x1db   :  { %vm450_vm12 = vcmp.gt.f32.partialorder %v333_v21, %v931_v18 }
 0x1dc   :  { %v672_v22 = vsel %vm450_vm12, 1.0, %v792_v17 }
 0x1dd   :  { %v545_v23 = vadd.f32 %v672_v22, %v544_v14 }
 0x1de   :  { %v413_v24 = vpop.permute.xlu1 %412 }
 0x1df   :  { %vm466_vm13 = vcmp.gt.f32.partialorder %v413_v24, %v939_v31 }
 0x1e0   :  { %v688_v25 = vsel %vm466_vm13, 1.0, %v792_v17 }
 0x1e1   :  { %v566_v26 = vadd.f32 %v688_v25, %v565_v20 }
 0x1e2   :  { %v338_v27 = vpop.permute.xlu1 %337 }
 0x1e3   :  { %vm451_vm14 = vcmp.gt.f32.partialorder %v338_v27, %v931_v18 }
 0x1e4   :  { %v673_v28 = vsel %vm451_vm14, 1.0, %v792_v17 }
 0x1e5   :  { %v546_v29 = vadd.f32 %v673_v28, %v545_v23 }
 0x1e6   :  { %v418_v30 = vpop.permute.xlu1 %417 }
 0x1e7   :  { %vm467_vm15 = vcmp.gt.f32.partialorder %v418_v30, %v939_v31 }
 0x1e8   :  { %v689_v32 = vsel %vm467_vm15, 1.0, %v792_v17 }
 0x1e9   :  { %v567_v33 = vadd.f32 %v689_v32, %v566_v26 }
 0x1ea   :  { %v343_v34 = vpop.permute.xlu1 %342 }
 0x1eb   :  { %vm452_vm0 = vcmp.gt.f32.partialorder %v343_v34, %v931_v18 }
 0x1ec   :  { %v674_v35 = vsel %vm452_vm0, 1.0, %v792_v17 }
 0x1ed   :  { %v547_v36 = vadd.f32 %v674_v35, %v546_v29 }
 0x1ee   :  { %v423_v37 = vpop.permute.xlu1 %422 }
 0x1ef   :  { %vm468_vm3 = vcmp.gt.f32.partialorder %v423_v37, %v939_v31 }
 0x1f0   :  { %v690_v40 = vsel %vm468_vm3, 1.0, %v792_v17 }
 0x1f1   :  { %v568_v13 = vadd.f32 %v690_v40, %v567_v33 }
 0x1f2   :  { %v348_v41 = vpop.permute.xlu1 %347 }
 0x1f3   :  { %vm453_vm4 = vcmp.gt.f32.partialorder %v348_v41, %v931_v18 }
 0x1f4   :  { %v675_v42 = vsel %vm453_vm4, 1.0, %v792_v17 }
 0x1f5   :  { %v548_v43 = vadd.f32 %v675_v42, %v547_v36 }
 0x1f6   :  { %v428_v45 = vpop.permute.xlu1 %427 }
 0x1f7   :  { %vm469_vm5 = vcmp.gt.f32.partialorder %v428_v45, %v939_v31  ;;  %v549_v48 = vrot.slane %v548_v43, 4 }
 0x1f8   :  { %v691_v46 = vsel %vm469_vm5, 1.0, %v792_v17  ;;  %v597_v17 = vsel %vm596_vm6, %v928_v16, 0.0 }
 0x1f9   :  { %v569_v38 = vadd.f32 %v691_v46, %v568_v13  ;;  %v550_v49 = vadd.f32 %v549_v48, %v548_v43 }
 0x1fb   :  { %v551_v50 = vrot.slane %v550_v49, 2  ;;  %v570_v2 = vrot.slane %v569_v38, 4 }
 0x1fd   :  { %v552_v39 = vadd.f32 %v551_v50, %v550_v49  ;;  %v571_v44 = vadd.f32 %v570_v2, %v569_v38 }
 0x1ff   :  { %v553_v52 = vrot.slane %v552_v39, 1  ;;  %v572_v53 = vrot.slane %v571_v44, 2 }
 0x201   :  { %v573_v18 = vadd.f32 %v572_v53, %v571_v44  ;;  %v554_v55 = vadd.f32 %v553_v52, %v552_v39 }
 0x203   :  { %v574_v57 = vrot.slane %v573_v18, 1  ;;  %vm578_vm7 = vcmp.lt.f32.partialorder %v554_v55, %v197_v56 }
 0x204   :  { %vm580_vm8 = vmor %vm34_vm2, %vm578_vm7 }
 0x205   :  { %v575_v62 = vadd.f32 %v574_v57, %v573_v18  ;;  %v582_v63 = vsel %vm580_vm8, %v912_v47, 0.0 }
 0x206   :  { %v584_v6 = vsel %vm67_vm1, %v582_v63, 0.0 }
 0x228   :  { %v194_v31 = vpop.xlane.xlu1 %193 }
 0x229   :  { %v196_v58 = vmul.f32 3.0, %v194_v31  ;;  %v598_v59 = vsel %vm596_vm6, %v194_v31, 0.0 }
 0x22a   :  { %v599_v60 = vadd.f32 %v598_v59, %v597_v17 }
 0x22b   :  { %v198_v61 = vmin.f32 %v196_v58, 63.0 }
 0x22c   :  { %600 = vadd.xlane.f32.xlu1 %v599_v60  ;;  %v72_v8 = vpop.xlane.xlu1 %71 }
 0x22d   :  { %vm579_vm9 = vcmp.lt.f32.partialorder %v575_v62, %v198_v61  ;;  %v73_v5 = vrot.slane %v72_v8, 4 }
 0x22e   :  { %vm581_vm11 = vmor %vm35_vm10, %vm579_vm9 }
 0x22f   :  { %v583_v4 = vsel %vm581_vm11, %v918_v51, 0.0  ;;  %v74_v15 = vadd.f32 %v73_v5, %v72_v8 }
 0x230   :  { %v585_v16 = vsel %vm67_vm1, %v583_v4, 0.0 }
 0x231   :  { %v586_v7 = vadd.f32 %v585_v16, %v584_v6  ;;  %v75_v9 = vrot.slane %v74_v15, 2 }
 0x233   :  { %587 = vadd.xlane.f32.xlu0 %v586_v7  ;;  %v76_v11 = vadd.f32 %v75_v9, %v74_v15 }
 0x235   :  { %v77_v12 = vrot.slane %v76_v11, 1 }
 0x237   :  { %v78_v0 = vadd.f32 %v77_v12, %v76_v11 }
 0x239   :  { %692 = vpush %v78_v0 }
 0x26a   :  { %s693_s0 = spop %692 }
 0x26b   :  { %v609_v47 = vstv %s693_s0 }
 0x26c   :  { %610 = vst [vmem:[#allocation2] sm:$0x1] %v609_v47 }
 0x26d   :  { %732 = shalt.err (!%p729_p4)
}
 0x26e   :  { %s733_s24 = scalar_lea.hbm %s1081_s4, 16 }
 0x26f   :  { %p734_p5 = scmp.ne.s32.totalorder %s1081_s4, %s733_s24  ;;  %p737_p6 = scmp.lt.u32.totalorder %s733_s24, %s1081_s4 }
 0x271   :  { %p739_p7 = pnand %p737_p6, %p734_p5 }
 0x273   :  { %742 = shalt.err (!%p739_p7)
}
 0x274   :  { %624 = dma.vmem_to_hbm [thread:$0]  %s622_s19, 16, %s1081_s4, [#allocation3]  }
 0x275   :  { %s794_s7 = smov [#allocation4]   ;;  %s795_s9 = smov [#allocation6]  }
 0x276   :  { %s631_s8 = sshll.u32 %s794_s7, 4  ;;  %s641_s4 = sshll.u32 %s795_s9, 4  ;;  %s632_s8 = int_to_ptr.vmem [resolvable:$true] %s631_s8  ;;  %s1045_s4 = int_to_ptr.vmem [resolvable:$true] %s641_s4 }
 0x277   :  { %s743_s12 = scalar_lea.vmem %s632_s8, 16  ;;  %s747_s2 = scalar_lea.vmem %s632_s8, 32 }
 0x278   :  { %p744_p8 = scmp.ne.s32.totalorder %s632_s8, %s743_s12  ;;  %p748_p9 = scmp.lt.s32.totalorder %s632_s8, %s632_s8 }
 0x279   :  { %p749_p10 = scmp.lt.s32.totalorder %s747_s2, %s743_s12 }
 0x27b   :  { %p750_p11 = por %p749_p10, %p748_p9 }
 0x27d   :  { %p751_p12 = pnand %p750_p11, %p744_p8 }
 0x2b9   :  { %v601_v10 = vpop.xlane.xlu1 %600 }
 0x2ba   :  { %v602_v51 = vrot.slane %v601_v10, 4 }
 0x2bc   :  { %v603_v3 = vadd.f32 %v602_v51, %v601_v10 }
 0x2be   :  { %v604_v14 = vrot.slane %v603_v3, 2 }
 0x2c0   :  { %v588_v1 = vpop.xlane.xlu0 %587  ;;  %v605_v21 = vadd.f32 %v604_v14, %v603_v3 }
 0x2c1   :  { %v589_v19 = vrot.slane %v588_v1, 4 }
 0x2c2   :  { %v606_v24 = vrot.slane %v605_v21, 1 }
 0x2c3   :  { %v590_v20 = vadd.f32 %v589_v19, %v588_v1 }
 0x2c4   :  { %v607_v27 = vadd.f32 %v606_v24, %v605_v21 }
 0x2c5   :  { %v591_v22 = vrot.slane %v590_v20, 2 }
 0x2c7   :  { %v592_v23 = vadd.f32 %v591_v22, %v590_v20 }
 0x2c9   :  { %v593_v25 = vrot.slane %v592_v23, 1 }
 0x2cb   :  { %v594_v26 = vadd.f32 %v593_v25, %v592_v23 }
 0x2cd   :  { %694 = vpush %v594_v26 }
 0x2ce   :  { %696 = vpush %v607_v27 }
 0x2fe   :  { %s695_s10 = spop %694 }
 0x2ff   :  { %v611_v28 = vstv %s695_s10  ;;  %s697_s11 = spop %696 }
 0x300   :  { %612 = vst [vmem:[#allocation4] sm:$0x1] %v611_v28  ;;  %v613_v29 = vstv %s697_s11 }
 0x301   :  { %614 = vst [vmem:[#allocation6] sm:$0x1] %v613_v29 }
 0x302   :  { %754 = shalt.err (!%p751_p12)
}
 0x303   :  { %s755_s14 = scalar_lea.hbm %s1082_s5, 16 }
 0x304   :  { %p756_p13 = scmp.ne.s32.totalorder %s1082_s5, %s755_s14  ;;  %p759_p0 = scmp.lt.u32.totalorder %s755_s14, %s1082_s5 }
 0x306   :  { %p761_p1 = pnand %p759_p0, %p756_p13 }
 0x308   :  { %764 = shalt.err (!%p761_p1)
}
 0x309   :  { %634 = dma.vmem_to_hbm [thread:$0]  %s632_s8, 16, %s1082_s5, [#allocation5]  }
 0x30a   :  { %s765_s19 = scalar_lea.vmem %s1045_s4, 16  ;;  %s769_s20 = scalar_lea.vmem %s1045_s4, 32 }
 0x30b   :  { %p766_p2 = scmp.ne.s32.totalorder %s1045_s4, %s765_s19  ;;  %p770_p3 = scmp.lt.s32.totalorder %s1045_s4, %s1045_s4 }
 0x30c   :  { %p771_p4 = scmp.lt.s32.totalorder %s769_s20, %s765_s19 }
 0x30e   :  { %p772_p5 = por %p771_p4, %p770_p3 }
 0x310   :  { %p773_p6 = pnand %p772_p5, %p766_p2 }
 0x312   :  { %776 = shalt.err (!%p773_p6)
}
 0x313   :  { %s777_s23 = scalar_lea.hbm %s1083_s6, 16 }
 0x314   :  { %p778_p7 = scmp.ne.s32.totalorder %s1083_s6, %s777_s23  ;;  %p781_p8 = scmp.lt.u32.totalorder %s777_s23, %s1083_s6 }
 0x316   :  { %p783_p9 = pnand %p781_p8, %p778_p7 }
 0x318   :  { %786 = shalt.err (!%p783_p9)
}
 0x319   :  { %644 = dma.vmem_to_hbm [thread:$0]  %s1045_s4, 16, %s1083_s6, [#allocation5]  }
 0x31a   :  { %787 = dma.done.wait [#allocation3], 16  }
 0x31b   :  { %788 = vsyncadd [#allocation3], 4294967280 }
 0x31c   :  { %789 = dma.done.wait [#allocation5], 32  }
 0x31d   :  { %790 = vsyncadd [#allocation5], 4294967264 }
 0x31e   :  { %654 = vsyncpa [#allocation3], 1 }
 0x31f   :  { %655 = vsyncpa [#allocation5], 1 }

</bundles_post_ra>
